<compile_context>
chip_gen: v7x
topology: tpu7x:2x2x1
jax: 0.10.0
libtpu: 0.0.40
codegen_flags: <defaults>
</compile_context>

<pallas_src>
import functools
import math

import jax
import jax.numpy as jnp
from jax.experimental import pallas as pl
from jax.experimental.pallas import tpu as pltpu

VMEM_LIMIT = 64 * 1024 * 1024          # safe on v5e/v6e/v7x

# default tile targets (fall back to full dim when the dim is not divisible):
#   v5e: keep 128-multiples, consider halving TK/TN; v6e: can widen TN to 512+;
#   v7x: these fit the 64 MiB budget with double-buffering.
MM_TM, MM_TN, MM_TK = 256, 256, 512
FFN_TM, FFN_TF = 256, 512
ATTN_TQ, ATTN_TK = 128, 128
RMS_TM = 256


def _fit(dim, target):
    """Use `target` if it divides `dim`, else fall back to the full dimension."""
    return target if dim % target == 0 else dim


# ----------------------------- tiled matmul --------------------------------

def _matmul_kernel(x_ref, w_ref, o_ref, acc_ref):
    @pl.when(pl.program_id(2) == 0)
    def _():
        acc_ref[...] = jnp.zeros_like(acc_ref)

    acc_ref[...] += jnp.dot(x_ref[...], w_ref[...],
                            preferred_element_type=jnp.float32)

    @pl.when(pl.program_id(2) == pl.num_programs(2) - 1)
    def _():
        o_ref[...] = acc_ref[...].astype(o_ref.dtype)


def pallas_matmul(x, w, out_dtype=jnp.bfloat16, tm=MM_TM, tn=MM_TN, tk=MM_TK):
    """x: (M, K), w: (K, N) -> (M, N) with f32 accumulation."""
    M, K = x.shape
    _, N = w.shape
    tm, tn, tk = _fit(M, tm), _fit(N, tn), _fit(K, tk)
    return pl.pallas_call(
        _matmul_kernel,
        out_shape=jax.ShapeDtypeStruct((M, N), out_dtype),
        grid=(M // tm, N // tn, K // tk),
        in_specs=[pl.BlockSpec((tm, tk), lambda i, j, k: (i, k)),
                  pl.BlockSpec((tk, tn), lambda i, j, k: (k, j))],
        out_specs=pl.BlockSpec((tm, tn), lambda i, j, k: (i, j)),
        scratch_shapes=[pltpu.VMEM((tm, tn), jnp.float32)],
        compiler_params=pltpu.CompilerParams(
            dimension_semantics=("parallel", "parallel", "arbitrary"),
            vmem_limit_bytes=VMEM_LIMIT),
    )(x, w)


# ------------------------------- RMSNorm ------------------------------------

def _rmsnorm_kernel(x_ref, w_ref, o_ref, *, eps):
    x = x_ref[...].astype(jnp.float32)
    ms = jnp.mean(x * x, axis=-1, keepdims=True)
    y = x * jax.lax.rsqrt(ms + eps) * w_ref[...].astype(jnp.float32)
    o_ref[...] = y.astype(o_ref.dtype)


def pallas_rmsnorm(x2d, w, eps, out_dtype=jnp.bfloat16, tm=RMS_TM):
    M, H = x2d.shape
    tm = _fit(M, tm)
    kern = functools.partial(_rmsnorm_kernel, eps=eps)
    return pl.pallas_call(
        kern,
        out_shape=jax.ShapeDtypeStruct((M, H), out_dtype),
        grid=(M // tm,),
        in_specs=[pl.BlockSpec((tm, H), lambda i: (i, 0)),
                  pl.BlockSpec((1, H), lambda i: (0, 0))],
        out_specs=pl.BlockSpec((tm, H), lambda i: (i, 0)),
        compiler_params=pltpu.CompilerParams(
            dimension_semantics=("parallel",),
            vmem_limit_bytes=VMEM_LIMIT),
    )(x2d, w.reshape(1, H))


# ---------------------- flash attention (+ in-kernel RoPE) ------------------

def _flash_attn_kernel(q_ref, k_ref, v_ref, cq_ref, sq_ref, ck_ref, sk_ref,
                       o_ref, m_sc, l_sc, acc_sc,
                       *, scale, pos_start, causal, tq, tk):
    qi = pl.program_id(2)
    ki = pl.program_id(3)

    @pl.when(ki == 0)
    def _():
        m_sc[...] = jnp.full_like(m_sc, -1e30)
        l_sc[...] = jnp.zeros_like(l_sc)
        acc_sc[...] = jnp.zeros_like(acc_sc)

    hd = q_ref.shape[-1]
    half = hd // 2

    def _rope(x, cos, sin):
        # rotate-half in the de-interleaved [real | imag] head layout.
        # sign is folded into the sin table ([-sin | sin]).
        x_rot = jnp.concatenate([x[:, half:], x[:, :half]], axis=-1)
        return x * cos + x_rot * sin

    def _body():
        q = q_ref[0, 0].astype(jnp.float32)
        k = k_ref[0, 0].astype(jnp.float32)
        qr = _rope(q, cq_ref[...], sq_ref[...]) * scale      # pre-scale q
        kr = _rope(k, ck_ref[...], sk_ref[...])

        # one K=head_dim score matmul, no transpose (contract last axes).
        s = jax.lax.dot_general(
            qr.astype(jnp.bfloat16), kr.astype(jnp.bfloat16),
            (((1,), (1,)), ((), ())),
            preferred_element_type=jnp.float32)              # (tq, tk)

        if causal:
            row = qi * tq + jax.lax.broadcasted_iota(jnp.int32, (tq, tk), 0)
            col = ki * tk + jax.lax.broadcasted_iota(jnp.int32, (tq, tk), 1)
            s = jnp.where(col > row + pos_start, -1e30, s)

        m_prev = m_sc[...]
        m_new = jnp.maximum(m_prev, jnp.max(s, axis=-1, keepdims=True))
        alpha = jnp.exp(m_prev - m_new)
        p = jnp.exp(s - m_new)
        l_sc[...] = alpha * l_sc[...] + jnp.sum(p, axis=-1, keepdims=True)
        acc_sc[...] = alpha * acc_sc[...] + jnp.dot(
            p.astype(v_ref.dtype), v_ref[0, 0],
            preferred_element_type=jnp.float32)
        m_sc[...] = m_new

    if causal:
        # skip kv tiles that lie entirely above the causal diagonal
        pl.when(ki * tk <= qi * tq + (tq - 1) + pos_start)(_body)
    else:
        _body()

    @pl.when(ki == pl.num_programs(3) - 1)
    def _():
        o_ref[0, 0] = (acc_sc[...] *
                       pl.reciprocal(l_sc[...], approx=True)).astype(o_ref.dtype)


def pallas_flash_attention(q, k, v, cos, sin, scale, pos_start, causal,
                           tq=ATTN_TQ, tk=ATTN_TK):
    """q/k/v: (B, nH, S, hd) bf16; cos/sin: (S, hd) f32 -> (B, nH, S, hd)."""
    B, nH, S, hd = q.shape
    tq, tk = _fit(S, tq), _fit(S, tk)
    kern = functools.partial(_flash_attn_kernel, scale=scale,
                             pos_start=pos_start, causal=causal, tq=tq, tk=tk)
    q_spec = pl.BlockSpec((1, 1, tq, hd), lambda b, h, qi, ki: (b, h, qi, 0))
    kv_spec = pl.BlockSpec((1, 1, tk, hd), lambda b, h, qi, ki: (b, h, ki, 0))
    cq_spec = pl.BlockSpec((tq, hd), lambda b, h, qi, ki: (qi, 0))
    ck_spec = pl.BlockSpec((tk, hd), lambda b, h, qi, ki: (ki, 0))
    return pl.pallas_call(
        kern,
        out_shape=jax.ShapeDtypeStruct((B, nH, S, hd), q.dtype),
        grid=(B, nH, S // tq, S // tk),
        in_specs=[q_spec, kv_spec, kv_spec, cq_spec, cq_spec, ck_spec, ck_spec],
        out_specs=q_spec,
        scratch_shapes=[pltpu.VMEM((tq, 1), jnp.float32),
                        pltpu.VMEM((tq, 1), jnp.float32),
                        pltpu.VMEM((tq, hd), jnp.float32)],
        compiler_params=pltpu.CompilerParams(
            dimension_semantics=("parallel", "parallel", "parallel", "arbitrary"),
            vmem_limit_bytes=VMEM_LIMIT),
    )(q, k, v, cos, sin, cos, sin)


# ------------------------------ fused SwiGLU FFN -----------------------------

def _ffn_kernel(x_ref, w1_ref, w2_ref, wo_ref, o_ref, acc_ref):
    f = pl.program_id(1)

    @pl.when(f == 0)
    def _():
        acc_ref[...] = jnp.zeros_like(acc_ref)

    x = x_ref[...]
    a = jnp.dot(x, w1_ref[...], preferred_element_type=jnp.float32)
    b = jnp.dot(x, w2_ref[...], preferred_element_type=jnp.float32)
    g = (a * jax.nn.sigmoid(a)) * b                 # SiLU gate in f32 (v5e-safe)
    acc_ref[...] += jnp.dot(g.astype(wo_ref.dtype), wo_ref[...],
                            preferred_element_type=jnp.float32)

    @pl.when(f == pl.num_programs(1) - 1)
    def _():
        o_ref[...] = acc_ref[...].astype(o_ref.dtype)


def pallas_ffn(x2d, w1, w2, wo, out_dtype=jnp.float32, tm=FFN_TM, tf=FFN_TF):
    M, H = x2d.shape
    F = w1.shape[1]
    tm, tf = _fit(M, tm), _fit(F, tf)
    return pl.pallas_call(
        _ffn_kernel,
        out_shape=jax.ShapeDtypeStruct((M, H), out_dtype),
        grid=(M // tm, F // tf),
        in_specs=[pl.BlockSpec((tm, H), lambda i, f: (i, 0)),
                  pl.BlockSpec((H, tf), lambda i, f: (0, f)),
                  pl.BlockSpec((H, tf), lambda i, f: (0, f)),
                  pl.BlockSpec((tf, H), lambda i, f: (f, 0))],
        out_specs=pl.BlockSpec((tm, H), lambda i, f: (i, 0)),
        scratch_shapes=[pltpu.VMEM((tm, H), jnp.float32)],
        compiler_params=pltpu.CompilerParams(
            dimension_semantics=("parallel", "arbitrary"),
            vmem_limit_bytes=VMEM_LIMIT),
    )(x2d, w1, w2, wo)


# ------------------------------ model glue -----------------------------------

def build_rope_tables(head_dim, end, theta=10000.0):
    """cos/sin tables in the de-interleaved rotate-half layout (sign folded)."""
    half = head_dim // 2
    inv = 1.0 / (theta ** (jnp.arange(0, half, dtype=jnp.float32) * 2.0 / head_dim))
    t = jnp.arange(end, dtype=jnp.float32)
    ang = jnp.outer(t, inv)                                   # (end, half)
    cos = jnp.cos(ang)
    sin = jnp.sin(ang)
    cos_cat = jnp.concatenate([cos, cos], axis=-1)            # (end, hd)
    sin_signed = jnp.concatenate([-sin, sin], axis=-1)        # (end, hd)
    return cos_cat, sin_signed


def _deinterleave_cols(w, n_heads, head_dim):
    """Permute output columns of wq/wk so each head emits [real | imag] halves.

    Attention scores are invariant to this consistent permutation of head_dim,
    so the model output is unchanged while rotary becomes a rotate-half
    (no per-forward strided gathers)."""
    idx = []
    for h in range(n_heads):
        base = h * head_dim
        idx.extend(base + i for i in range(0, head_dim, 2))
        idx.extend(base + i for i in range(1, head_dim, 2))
    return w[:, jnp.array(idx, dtype=jnp.int32)]


def init_params(key, vocab_size, hidden, n_heads, n_layers):
    def nrm(k, shape, scale=0.02):
        return (scale * jax.random.normal(k, shape)).astype(jnp.float32)

    keys = jax.random.split(key, 2 + 7 * n_layers)
    params = {
        "wte": nrm(keys[0], (vocab_size, hidden)),
        "norm_w": jnp.ones((hidden,), jnp.float32),
        "output": nrm(keys[1], (hidden, vocab_size)),
        "layers": [],
    }
    for l in range(n_layers):
        k = keys[2 + 7 * l: 2 + 7 * (l + 1)]
        params["layers"].append({
            "ln1_w": jnp.ones((hidden,), jnp.float32),
            "ln2_w": jnp.ones((hidden,), jnp.float32),
            "wq": nrm(k[0], (hidden, hidden)),
            "wk": nrm(k[1], (hidden, hidden)),
            "wv": nrm(k[2], (hidden, hidden)),
            "wo": nrm(k[3], (hidden, hidden)),
            "w1": nrm(k[4], (hidden, 4 * hidden)),
            "w2": nrm(k[5], (hidden, 4 * hidden)),
            "wf": nrm(k[6], (4 * hidden, hidden)),
        })
    return params


def prepare_params(raw, n_heads, head_dim):
    """One-time conversion to kernel layout: bf16 weights, de-interleaved
    wq/wk columns, fused (H, 3H) QKV weight."""
    prepped = {
        "wte": raw["wte"].astype(jnp.bfloat16),
        "norm_w": raw["norm_w"].astype(jnp.float32),
        "output": raw["output"].astype(jnp.bfloat16),
        "layers": [],
    }
    for lp in raw["layers"]:
        wq = _deinterleave_cols(lp["wq"], n_heads, head_dim)
        wk = _deinterleave_cols(lp["wk"], n_heads, head_dim)
        wqkv = jnp.concatenate([wq, wk, lp["wv"]], axis=1).astype(jnp.bfloat16)
        prepped["layers"].append({
            "ln1_w": lp["ln1_w"].astype(jnp.float32),
            "ln2_w": lp["ln2_w"].astype(jnp.float32),
            "wqkv": wqkv,
            "wo": lp["wo"].astype(jnp.bfloat16),
            "w1": lp["w1"].astype(jnp.bfloat16),
            "w2": lp["w2"].astype(jnp.bfloat16),
            "wf": lp["wf"].astype(jnp.bfloat16),
        })
    return prepped


def llama_forward(params, input_ids, cfg, rope_cos, rope_sin, pos_start=0):
    B, S = input_ids.shape
    H = cfg["hidden_size"]
    nH = cfg["n_heads"]
    hd = H // nH
    eps = cfg["eps"]
    scale = 1.0 / math.sqrt(hd)
    causal = S > 1

    # embedding lookup (gather) kept in JAX glue; residual stream in f32
    h = params["wte"][input_ids].astype(jnp.float32)

    cos = rope_cos[pos_start:pos_start + S]
    sin = rope_sin[pos_start:pos_start + S]

    for lp in params["layers"]:
        # ---- attention block ----
        xn = pallas_rmsnorm(h.reshape(B * S, H), lp["ln1_w"], eps)     # bf16
        qkv = pallas_matmul(xn, lp["wqkv"], out_dtype=jnp.bfloat16)    # (B*S, 3H)
        q, k, v = jnp.split(qkv, 3, axis=-1)

        def heads(t):
            return t.reshape(B, S, nH, hd).transpose(0, 2, 1, 3)       # (B,nH,S,hd)

        attn = pallas_flash_attention(heads(q), heads(k), heads(v),
                                      cos, sin, scale, pos_start, causal)
        attn = attn.transpose(0, 2, 1, 3).reshape(B * S, H)
        h = h + pallas_matmul(attn, lp["wo"],
                              out_dtype=jnp.float32).reshape(B, S, H)

        # ---- feed-forward block ----
        xn2 = pallas_rmsnorm(h.reshape(B * S, H), lp["ln2_w"], eps)    # bf16
        h = h + pallas_ffn(xn2, lp["w1"], lp["w2"], lp["wf"]).reshape(B, S, H)

    # Final norm is row-wise, so norming only the last token matches norming the
    # whole sequence and then slicing.
    last = pallas_rmsnorm(h[:, -1, :], params["norm_w"], eps)          # (B, H) bf16
    pad = max(0, 8 - B)
    if pad:
        last = jnp.pad(last, ((0, pad), (0, 0)))                       # >=8 sublanes
    logits = pallas_matmul(last, params["output"], out_dtype=jnp.float32)
    return logits[:B]


# --------------------------------- main -------------------------------------

if __name__ == "__main__":
    cfg = {
        "eps": 1e-6,
        "hidden_size": 32,
        "n_heads": 4,
        "n_layers": 2,
        "vocab_size": 64,
        "max_sentence_length": 64,
    }
    head_dim = cfg["hidden_size"] // cfg["n_heads"]

    key = jax.random.PRNGKey(0)
    pkey, ikey = jax.random.split(key)
    raw_params = init_params(pkey, cfg["vocab_size"], cfg["hidden_size"],
                             cfg["n_heads"], cfg["n_layers"])
    params = prepare_params(raw_params, cfg["n_heads"], head_dim)

    # rotary tables built once, outside the forward
    rope_cos, rope_sin = build_rope_tables(head_dim,
                                           cfg["max_sentence_length"] * 2)

    B, S = 2, 8
    input_ids = jax.random.randint(ikey, (B, S), 0, cfg["vocab_size"],
                                   dtype=jnp.int32)

    logits = llama_forward(params, input_ids, cfg, rope_cos, rope_sin,
                           pos_start=0)
    logits = jax.block_until_ready(logits)

    assert logits.shape == (B, cfg["vocab_size"])
    assert bool(jnp.all(jnp.isfinite(logits)))
    # TODO(synk): `generate` / sample_top_p (host-side sampling loop, sort,
    # multinomial) is control flow outside the forward pass and is not a kernel.
    print("KERNEL_OK")
</pallas_src>

<mosaic_0001>
module attributes {stable_mosaic.version = 11 : i64} {
  func.func @_rmsnorm_kernel(%arg0: i32, %arg1: memref<16x32xf32, #tpu.memory_space<vmem>>, %arg2: memref<1x32xf32, #tpu.memory_space<vmem>>, %arg3: memref<16x32xbf16, #tpu.memory_space<vmem>>) attributes {dimension_semantics = [#tpu.dimension_semantics<parallel>], iteration_bounds = array<i64: 1>, scalar_prefetch = 0 : i64, scratch_operands = 0 : i64, tpu.core_type = #tpu.core_type<tc>, window_params = [{transform_indices = @transform_0, window_bounds = array<i64: 16, 32>}, {pipeline_mode = #tpu.pipeline_mode<synchronous>, transform_indices = @transform_1, window_bounds = array<i64: 1, 32>}, {transform_indices = @transform_2, window_bounds = array<i64: 16, 32>}]} {
    %c0 = arith.constant 0 : index
    %c0_0 = arith.constant 0 : index
    %0 = vector.load %arg1[%c0, %c0_0] : memref<16x32xf32, #tpu.memory_space<vmem>>, vector<16x32xf32>
    %1 = arith.mulf %0, %0 : vector<16x32xf32>
    %cst = arith.constant dense<0.000000e+00> : vector<16xf32>
    %2 = vector.multi_reduction <add>, %1, %cst [1] : vector<16x32xf32> to vector<16xf32>
    %3 = vector.shape_cast %2 : vector<16xf32> to vector<16x1xf32>
    %cst_1 = arith.constant 3.200000e+01 : f32
    %4 = vector.broadcast %cst_1 : f32 to vector<16x1xf32>
    %5 = arith.divf %3, %4 : vector<16x1xf32>
    %cst_2 = arith.constant 9.99999997E-7 : f32
    %6 = vector.broadcast %cst_2 : f32 to vector<16x1xf32>
    %7 = arith.addf %5, %6 : vector<16x1xf32>
    %8 = math.rsqrt %7 : vector<16x1xf32>
    %9 = vector.broadcast %8 : vector<16x1xf32> to vector<16x32xf32>
    %10 = arith.mulf %0, %9 : vector<16x32xf32>
    %c0_3 = arith.constant 0 : index
    %c0_4 = arith.constant 0 : index
    %11 = vector.load %arg2[%c0_3, %c0_4] : memref<1x32xf32, #tpu.memory_space<vmem>>, vector<1x32xf32>
    %12 = vector.broadcast %11 : vector<1x32xf32> to vector<16x32xf32>
    %13 = arith.mulf %10, %12 : vector<16x32xf32>
    %14 = arith.truncf %13 : vector<16x32xf32> to vector<16x32xbf16>
    %c0_5 = arith.constant 0 : index
    %c0_6 = arith.constant 0 : index
    %15 = vector.load %arg3[%c0_5, %c0_6] : memref<16x32xbf16, #tpu.memory_space<vmem>>, vector<16x32xbf16>
    tpu.vector_store %arg3[%c0_5, %c0_6], %14 {strides = array<i32>} : memref<16x32xbf16, #tpu.memory_space<vmem>>, vector<16x32xbf16>,
    return
  }
  func.func @transform_0(%arg0: i32) -> (i32, i32) {
    %c0_i32 = arith.constant 0 : i32
    %c0_i32_0 = arith.constant 0 : i32
    return %arg0, %c0_i32 : i32, i32
  }
  func.func @transform_1(%arg0: i32) -> (i32, i32) {
    %c0_i32 = arith.constant 0 : i32
    %c0_i32_0 = arith.constant 0 : i32
    %c0_i32_1 = arith.constant 0 : i32
    return %c0_i32, %c0_i32_0 : i32, i32
  }
  func.func @transform_2(%arg0: i32) -> (i32, i32) {
    %c0_i32 = arith.constant 0 : i32
    %c0_i32_0 = arith.constant 0 : i32
    return %arg0, %c0_i32 : i32, i32
  }
}

</mosaic_0001>

<bundles_post_ra>
// kernel: tpu_custom_call.1
= control target key start
LH: loop header
LB: loop body
LE: loop exit
PB: predicated region body
PF: predicated region fallthrough
CT: control target
= control target key end

     0   :  { %7 = vsyncpa [#allocation3], 0  ;;  %s242_s0 = inlined_call_operand.hbm [shape: f32[16,32], index: 0, kind: input, shape index: {}]   ;;  %s243_s1 = inlined_call_operand.hbm [shape: f32[1,32], index: 1, kind: input, shape index: {}]   ;;  %s244_s2 = inlined_call_operand.hbm [shape: bf16[16,32], index: 2, kind: output, shape index: {}]  }
   0x1   :  { %8 = vsyncpa [#allocation6], 0 }
   0x2   :  { %9 = vsyncpa [#allocation4], 0  ;;  %s184_s9 = smov [#allocation2]   ;;  %s112_s13 = scalar_lea.hbm %s242_s0, 256 }
   0x3   :  { %s15_s10 = sshll.u32 %s184_s9, 4  ;;  %p113_p0 = scmp.ne.s32.totalorder %s242_s0, %s112_s13  ;;  %s16_s10 = int_to_ptr.vmem [resolvable:$true] %s15_s10 }
   0x4   :  { %p116_p1 = scmp.lt.u32.totalorder %s112_s13, %s242_s0 }
   0x6   :  { %p118_p2 = pnand %p116_p1, %p113_p0 }
   0x8   :  { %121 = shalt.err (!%p118_p2)
}
   0x9   :  { %s122_s18 = scalar_lea.vmem %s16_s10, 256  ;;  %p127_p4 = scmp.lt.s32.totalorder %s16_s10, %s16_s10 }
   0xa   :  { %p123_p3 = scmp.ne.s32.totalorder %s16_s10, %s122_s18  ;;  %p128_p5 = scmp.lt.s32.totalorder %s122_s18, %s122_s18 }
   0xc   :  { %p129_p6 = por %p128_p5, %p127_p4 }
   0xe   :  { %p130_p7 = pnand %p129_p6, %p123_p3 }
  0x10   :  { %133 = shalt.err (!%p130_p7)
}
  0x11   :  { %s185_s19 = smov 128   ;;  %s186_s20 = smov 8  }
  0x12   :  { %21 = dma.hbm_to_vmem [thread:$0]  %s242_s0, 256, %s16_s10, [#allocation3], %s185_s19, %s185_s19, %s186_s20  }
  0x13   :  { %s187_s23 = smov [#allocation5]   ;;  %s134_s27 = scalar_lea.hbm %s243_s1, 16 }
  0x14   :  { %s28_s24 = sshll.u32 %s187_s23, 4  ;;  %p135_p8 = scmp.ne.s32.totalorder %s243_s1, %s134_s27  ;;  %s29_s24 = int_to_ptr.vmem [resolvable:$true] %s28_s24 }
  0x15   :  { %p138_p9 = scmp.lt.u32.totalorder %s134_s27, %s243_s1 }
  0x17   :  { %p140_p10 = pnand %p138_p9, %p135_p8 }
  0x19   :  { %143 = shalt.err (!%p140_p10)
}
  0x1a   :  { %s144_s4 = scalar_lea.vmem %s29_s24, 16  ;;  %s148_s0 = scalar_lea.vmem %s29_s24, 32 }
  0x1b   :  { %p145_p11 = scmp.ne.s32.totalorder %s29_s24, %s144_s4  ;;  %p149_p12 = scmp.lt.s32.totalorder %s29_s24, %s29_s24 }
  0x1c   :  { %p150_p13 = scmp.lt.s32.totalorder %s148_s0, %s144_s4 }
  0x1e   :  { %p151_p0 = por %p150_p13, %p149_p12 }
  0x20   :  { %p152_p1 = pnand %p151_p0, %p145_p11 }
  0x22   :  { %155 = shalt.err (!%p152_p1)
}
  0x23   :  { %31 = dma.hbm_to_vmem [thread:$0]  %s243_s1, 16, %s29_s24, [#allocation6]  }
  0x24   :  { %178 = dma.done.wait [#allocation3], 256  }
  0x25   :  { %179 = vsyncadd [#allocation3], 4294967040 }
  0x26   :  { %180 = dma.done.wait [#allocation6], 16  }
  0x27   :  { %181 = vsyncadd [#allocation6], 4294967280  ;;  %v38_v0 = vld [vmem:[#allocation2] sm:$0xff]  ;;  %vm42_vm0 = vcmask 261120   ;;  %v39_v1 = vld [vmem:[#allocation2 + $0x8] sm:$0xff]  ;;  %vm75_vm1 = vcmask 257024  }
  0x28   :  { %v40_v2 = vmul.f32 %v38_v0, %v38_v0  ;;  %v41_v3 = vmul.f32 %v39_v1, %v39_v1  ;;  %v96_v13 = vld [vmem:[#allocation5] ss:$0 sm:$0xff]  ;;  %s188_s1 = smov [#allocation7]  }
  0x29   :  { %s83_s7 = sshll.u32 %s188_s1, 4  ;;  %s84_s7 = int_to_ptr.vmem [resolvable:$true] %s83_s7 }
  0x2a   :  { %v43_v4 = vsel %vm42_vm0, %v40_v2, 0.0  ;;  %v46_v5 = vsel %vm42_vm0, %v41_v3, 0.0  ;;  %s156_s8 = scalar_lea.vmem %s84_s7, 128  ;;  %p161_p3 = scmp.lt.s32.totalorder %s84_s7, %s84_s7 }
  0x2b   :  { %44 = vadd.xlane.f32.xlu0 %v43_v4  ;;  %p157_p2 = scmp.ne.s32.totalorder %s84_s7, %s156_s8  ;;  %p162_p4 = scmp.lt.s32.totalorder %s156_s8, %s156_s8 }
  0x2d   :  { %p163_p5 = por %p162_p4, %p161_p3 }
  0x2f   :  { %47 = vadd.xlane.f32.xlu0 %v46_v5  ;;  %p164_p6 = pnand %p163_p5, %p157_p2 }
  0xb8   :  { %v45_v6 = vpop.xlane.xlu0 %44 }
  0xb9   :  { %v50_v7 = vmul.f32 0.03125, %v45_v6 }
  0xbb   :  { %v52_v8 = vadd.f32 1e-06, %v50_v7 }
  0xbc   :  { %v48_v9 = vpop.xlane.xlu0 %47 }
  0xbd   :  { %108 = vrsqrt.f32 %v52_v8  ;;  %v51_v10 = vmul.f32 0.03125, %v48_v9 }
  0xbf   :  { %v53_v11 = vadd.f32 1e-06, %v51_v10 }
  0xc1   :  { %110 = vrsqrt.f32 %v53_v11 }
  0xc7   :  { %v109_v12 = vpop.eup %108 }
  0xc8   :  { %v56_v14 = vmul.f32 %v109_v12, %v38_v0 }
  0xca   :  { %v65_v15 = vmul.f32 %v96_v13, %v56_v14 }
  0xcb   :  { %v111_v16 = vpop.eup %110 }
  0xcc   :  { %v57_v17 = vmul.f32 %v111_v16, %v39_v1  ;;  %v99_v18 = vpack.c.bf16 %v65_v15, %v65_v15 }
  0xce   :  { %v66_v19 = vmul.f32 %v96_v13, %v57_v17  ;;  %76 = vst.msk [vmem:[#allocation7] sm:$0xf] %vm75_vm1, %v99_v18 }
  0xd0   :  { %v100_v20 = vpack.c.bf16 %v66_v19, %v66_v19 }
  0xd2   :  { %77 = vst.msk [vmem:[#allocation7 + $0x4] sm:$0xf] %vm75_vm1, %v100_v20 }
  0xd3   :  { %167 = shalt.err (!%p164_p6)
}
  0xd4   :  { %s168_s11 = scalar_lea.hbm %s244_s2, 128 }
  0xd5   :  { %p169_p7 = scmp.ne.s32.totalorder %s244_s2, %s168_s11  ;;  %p172_p8 = scmp.lt.u32.totalorder %s168_s11, %s244_s2 }
  0xd7   :  { %p174_p9 = pnand %p172_p8, %p169_p7 }
  0xd9   :  { %177 = shalt.err (!%p174_p9)
}
  0xda   :  { %s189_s16 = smov 64   ;;  %s190_s17 = smov 4  }
  0xdb   :  { %89 = dma.vmem_to_hbm [thread:$0]  %s84_s7, 128, %s244_s2, [#allocation4], %s189_s16, %s189_s16, %s190_s17  }
  0xdc   :  { %182 = dma.done.wait [#allocation4], 128  }
  0xdd   :  { %183 = vsyncadd [#allocation4], 4294967168 }
  0xde   :  { %93 = vsyncpa [#allocation3], 1 }
  0xdf   :  { %94 = vsyncpa [#allocation6], 1 }
  0xe0   :  { %95 = vsyncpa [#allocation4], 1 }

</bundles_post_ra>
